<compile_context>
chip_gen: v6e
topology: v6e:2x2x1
jax: 0.10.0
libtpu: 0.0.40
codegen_flags: <defaults>
</compile_context>

<pallas_src>
import jax
import jax.numpy as jnp
from jax.experimental import pallas as pl
from jax.experimental.pallas import tpu as pltpu


_LANE = 128
_MIN_BT = 128          # lane-dense minimum for the (2, bt) output block
_DEFAULT_BT = 4096     # ~12.6 MiB of double-buffered f32 inputs at F=128


def bpr_kernel(u_ref, ii_ref, ij_ref, out_ref):
    """Per-batch-tile row-wise dot products (VPU multiply + XLU lane reduce).

    u_ref/ii_ref/ij_ref : (bt, F) tiles of the gathered embeddings.
    out_ref             : (2, bt) lane-dense tile; row 0 = prediction_i,
                          row 1 = prediction_j.
    """
    # Upcast after load (HBM traffic stays in the stored dtype); f32 accumulate.
    u = u_ref[...].astype(jnp.float32)
    pi = jnp.sum(u * ii_ref[...].astype(jnp.float32), axis=-1)   # (bt,)
    pj = jnp.sum(u * ij_ref[...].astype(jnp.float32), axis=-1)   # (bt,)
    # One lane-dense (2, bt) store; reduce + relayout ride the otherwise-idle
    # XLU. (If a v7x bundle dump ever shows the XLU slot binding, move the
    # reduction to the idle MXU via jnp.dot(prod, ones((F, 1))) instead.)
    out_ref[...] = jnp.stack([pi, pj], axis=0).astype(out_ref.dtype)


def _tile_vmem_bytes(bt, n_factors, itemsize):
    # 3 inputs x 2 pipeline buffers + 2 double-buffered (2, bt) f32 outputs.
    return 3 * 2 * bt * n_factors * itemsize + 2 * 2 * bt * 4


def _vmem_limit_bytes():
    """Per-generation scoped-VMEM limit with ~16 MiB headroom."""
    try:
        cap = int(pltpu.get_tpu_info().vmem_capacity_bytes)
    except Exception:
        cap = 64 << 20          # conservative fallback (v7x physical VMEM)
    # ~48 MiB on v7x (64 MiB physical), capped at ~100 MiB on v5e/v6e (128 MiB).
    return int(min(max(cap - (16 << 20), 32 << 20), 100 << 20))


def _pick_bt(batch, n_factors, itemsize, vmem_limit, requested=None):
    """Pick a lane-aligned batch tile sized against the scoped-VMEM budget."""
    if requested is not None:
        bt = max(_MIN_BT, (int(requested) // _LANE) * _LANE)
    else:
        bt = _DEFAULT_BT
    # Fit the double-buffered tile comfortably inside the scoped limit.
    budget = (vmem_limit * 3) // 4
    while bt > _MIN_BT and _tile_vmem_bytes(bt, n_factors, itemsize) > budget:
        bt = max(_MIN_BT, ((bt // 2) // _LANE) * _LANE)
    if requested is not None:
        return bt
    # Keep >= 4 grid steps when the batch allows it: v7x shards the "parallel"
    # axis across 2 TensorCores and each core needs >= 2 steps to pipeline.
    while bt > _MIN_BT and pl.cdiv(batch, bt) < 4:
        bt //= 2
    # Prefer an even tile count so the two v7x cores get equal work.
    if bt > _MIN_BT and pl.cdiv(batch, bt) % 2 == 1 and pl.cdiv(batch, bt) < 16:
        bt //= 2
    return bt


def bpr_forward(user_factors, item_factors, user, item_i, item_j, *, bt=None):
    """Pallas-backed BPR forward.

    user_factors : (n_users, F) float32 (or bf16)
    item_factors : (n_items, F) float32 (or bf16)
    user, item_i, item_j : (B,) int32 index arrays
    Returns (prediction_i, prediction_j), each (B, 1) float32.
    """
    n_factors = user_factors.shape[-1]
    batch = user.shape[0]
    itemsize = jnp.dtype(user_factors.dtype).itemsize

    vmem_limit = _vmem_limit_bytes()
    bt = _pick_bt(batch, n_factors, itemsize, vmem_limit, bt)
    num_tiles = pl.cdiv(batch, bt)
    batch_pad = num_tiles * bt

    # Pad the index arrays (index 0 is always valid); padded rows are sliced
    # off the kernel output below.
    if batch_pad != batch:
        pad = batch_pad - batch
        user = jnp.pad(user, (0, pad))
        item_i = jnp.pad(item_i, (0, pad))
        item_j = jnp.pad(item_j, (0, pad))

    # Embedding lookups stay in XLA; allow_input_fusion below lets XLA fuse
    # them into the pallas_call operands (skipping the HBM round trip) when it
    # deems it legal/profitable.
    u = jnp.take(user_factors, user, axis=0)      # (B_pad, F)
    ii = jnp.take(item_factors, item_i, axis=0)   # (B_pad, F)
    ij = jnp.take(item_factors, item_j, axis=0)   # (B_pad, F)

    cost = pl.CostEstimate(
        flops=4 * batch_pad * n_factors,
        transcendentals=0,
        bytes_accessed=3 * batch_pad * n_factors * itemsize + 2 * batch_pad * 4,
    )

    out = pl.pallas_call(
        bpr_kernel,
        out_shape=jax.ShapeDtypeStruct((2, batch_pad), jnp.float32),
        grid_spec=pltpu.PrefetchScalarGridSpec(
            num_scalar_prefetch=0,
            grid=(num_tiles,),
            in_specs=[
                pl.BlockSpec((bt, n_factors), lambda b: (b, 0)),  # user rows
                pl.BlockSpec((bt, n_factors), lambda b: (b, 0)),  # item_i rows
                pl.BlockSpec((bt, n_factors), lambda b: (b, 0)),  # item_j rows
            ],
            out_specs=pl.BlockSpec((2, bt), lambda b: (0, b)),    # lane-dense
        ),
        compiler_params=pltpu.CompilerParams(
            dimension_semantics=("parallel",),
            vmem_limit_bytes=vmem_limit,
            allow_input_fusion=[True, True, True],
        ),
        cost_estimate=cost,
    )(u, ii, ij)

    prediction_i = out[0, :batch].reshape(batch, 1)
    prediction_j = out[1, :batch].reshape(batch, 1)
    return prediction_i, prediction_j


if __name__ == "__main__":
    # Small, deterministic problem sizes. batch is NOT a multiple of the tile,
    # so the cdiv + padding path and a multi-step ("parallel") grid are exercised.
    n_users, n_items, n_factors = 64, 128, 128
    batch = 200

    key = jax.random.PRNGKey(0)
    k_uf, k_if, k_u, k_i, k_j = jax.random.split(key, 5)

    # torch.nn.Embedding default init ~ N(0, 1)
    user_factors = jax.random.normal(k_uf, (n_users, n_factors), dtype=jnp.float32)
    item_factors = jax.random.normal(k_if, (n_items, n_factors), dtype=jnp.float32)

    user = jax.random.randint(k_u, (batch,), 0, n_users, dtype=jnp.int32)
    item_i = jax.random.randint(k_i, (batch,), 0, n_items, dtype=jnp.int32)
    item_j = jax.random.randint(k_j, (batch,), 0, n_items, dtype=jnp.int32)

    pred_i, pred_j = jax.jit(bpr_forward)(
        user_factors, item_factors, user, item_i, item_j
    )
    jax.block_until_ready((pred_i, pred_j))

    # Pure-JAX reference for correctness.
    u_ref = user_factors[user]
    ii_ref = item_factors[item_i]
    ij_ref = item_factors[item_j]
    ref_i = jnp.sum(u_ref * ii_ref, axis=1, keepdims=True)
    ref_j = jnp.sum(u_ref * ij_ref, axis=1, keepdims=True)

    assert pred_i.shape == (batch, 1) and pred_j.shape == (batch, 1)
    assert jnp.allclose(pred_i, ref_i, rtol=1e-5, atol=1e-5)
    assert jnp.allclose(pred_j, ref_j, rtol=1e-5, atol=1e-5)

    print("KERNEL_OK")
</pallas_src>

<mosaic_0001>
module attributes {stable_mosaic.version = 11 : i64} {
  func.func @bpr_kernel(%arg0: i32, %arg1: memref<128x128xf32, #tpu.memory_space<vmem>>, %arg2: memref<128x128xf32, #tpu.memory_space<vmem>>, %arg3: memref<128x128xf32, #tpu.memory_space<vmem>>, %arg4: memref<2x128xf32, #tpu.memory_space<vmem>>) attributes {dimension_semantics = [#tpu.dimension_semantics<parallel>], iteration_bounds = array<i64: 2>, scalar_prefetch = 0 : i64, scratch_operands = 0 : i64, tpu.core_type = #tpu.core_type<tc>, window_params = [{transform_indices = @transform_0, window_bounds = array<i64: 128, 128>}, {transform_indices = @transform_1, window_bounds = array<i64: 128, 128>}, {transform_indices = @transform_2, window_bounds = array<i64: 128, 128>}, {transform_indices = @transform_3, window_bounds = array<i64: 2, 128>}]} {
    %c0 = arith.constant 0 : index
    %c0_0 = arith.constant 0 : index
    %0 = vector.load %arg1[%c0, %c0_0] : memref<128x128xf32, #tpu.memory_space<vmem>>, vector<128x128xf32>
    %c0_1 = arith.constant 0 : index
    %c0_2 = arith.constant 0 : index
    %1 = vector.load %arg2[%c0_1, %c0_2] : memref<128x128xf32, #tpu.memory_space<vmem>>, vector<128x128xf32>
    %2 = arith.mulf %0, %1 : vector<128x128xf32>
    %cst = arith.constant dense<0.000000e+00> : vector<128xf32>
    %3 = vector.multi_reduction <add>, %2, %cst [1] : vector<128x128xf32> to vector<128xf32>
    %c0_3 = arith.constant 0 : index
    %c0_4 = arith.constant 0 : index
    %4 = vector.load %arg3[%c0_3, %c0_4] : memref<128x128xf32, #tpu.memory_space<vmem>>, vector<128x128xf32>
    %5 = arith.mulf %0, %4 : vector<128x128xf32>
    %cst_5 = arith.constant dense<0.000000e+00> : vector<128xf32>
    %6 = vector.multi_reduction <add>, %5, %cst_5 [1] : vector<128x128xf32> to vector<128xf32>
    %7 = vector.shape_cast %3 : vector<128xf32> to vector<1x128xf32>
    %8 = vector.shape_cast %6 : vector<128xf32> to vector<1x128xf32>
    %9 = tpu.concatenate %7, %8 in 0 : vector<1x128xf32>, vector<1x128xf32> -> vector<2x128xf32>
    %c0_6 = arith.constant 0 : index
    %c0_7 = arith.constant 0 : index
    %10 = vector.load %arg4[%c0_6, %c0_7] : memref<2x128xf32, #tpu.memory_space<vmem>>, vector<2x128xf32>
    tpu.vector_store %arg4[%c0_6, %c0_7], %9 {strides = array<i32>} : memref<2x128xf32, #tpu.memory_space<vmem>>, vector<2x128xf32>,
    return
  }
  func.func @transform_0(%arg0: i32) -> (i32, i32) {
    %c0_i32 = arith.constant 0 : i32
    %c0_i32_0 = arith.constant 0 : i32
    return %arg0, %c0_i32 : i32, i32
  }
  func.func @transform_1(%arg0: i32) -> (i32, i32) {
    %c0_i32 = arith.constant 0 : i32
    %c0_i32_0 = arith.constant 0 : i32
    return %arg0, %c0_i32 : i32, i32
  }
  func.func @transform_2(%arg0: i32) -> (i32, i32) {
    %c0_i32 = arith.constant 0 : i32
    %c0_i32_0 = arith.constant 0 : i32
    return %arg0, %c0_i32 : i32, i32
  }
  func.func @transform_3(%arg0: i32) -> (i32, i32) {
    %c0_i32 = arith.constant 0 : i32
    %c0_i32_0 = arith.constant 0 : i32
    return %c0_i32, %arg0 : i32, i32
  }
}

</mosaic_0001>

<bundles_post_ra>
// kernel: bpr_forward.2
= control target key start
LH: loop header
LB: loop body
LE: loop exit
PB: predicated region body
PF: predicated region fallthrough
CT: control target
= control target key end

     0   :  { %s2710_s26 = smov 0   ;;  %s3527_s0 = inlined_call_operand.vmem [shape: f32[256,128], index: 0, kind: input, shape index: {}]   ;;  %s3528_s1 = inlined_call_operand.vmem [shape: f32[256,128], index: 1, kind: input, shape index: {}]   ;;  %s3529_s2 = inlined_call_operand.vmem [shape: f32[256,128], index: 2, kind: input, shape index: {}]   ;;  %s3530_s3 = inlined_call_operand.<no memory space> [shape: f32[], index: 3, kind: input, shape index: {}]   ;;  %s3531_s4 = inlined_call_operand.vmem [shape: pred[256], index: 4, kind: input, shape index: {}]   ;;  %s3532_s5 = inlined_call_operand.vmem [shape: pred[256], index: 5, kind: input, shape index: {}]   ;;  %s3533_s6 = inlined_call_operand.vmem [shape: pred[256], index: 6, kind: input, shape index: {}]   ;;  %s3534_s7 = inlined_call_operand.vmem [shape: f32[2,256], index: 7, kind: output, shape index: {}]  }
   0x1   :  { %3583 = sst [smem:[#allocation29_spill]] %s3527_s0  ;;  %v2708_v0 = vstv %s3530_s3 }
   0x2   :  { %3584 = sst [smem:[#allocation30_spill]] %s3528_s1 }
   0x3   :  { %3585 = sst [smem:[#allocation31_spill]] %s3529_s2 }
   0x4   :  { %3586 = sst [smem:[#allocation32_spill]] %s3533_s6 }
   0x5   :  { %3587 = sst [smem:[#allocation33_spill]] %s3534_s7 }
   0x6 LB: > { %3588 = sst [smem:[#allocation5_spill]] %s2663_s26  ;;  %s2716_s27 = sadd.s32 4294967295, %s2663_s26   ;;  %s2663_s26 = sphi %s2710_s26, %s20_s26  }
   0x7   : > { %3589 = sst [smem:[#allocation6_spill]] %s2716_s27  ;;  %p2531_p0 = scmp.ge.s32.totalorder %s2663_s26, 1 }
   0x8   : > { %p299_p1 = scmp.lt.s32.totalorder %s2663_s26, 3 }
   0xa   : > { %p300_p2 = pnand %p2531_p0, %p299_p1 }
   0xc   : > { %303 = sbr.rel (%p300_p2) target bundleno = 452 (0x1c4), region = 44 }
  0x11   : > { %s2721_s28 = sshll.u32 %s2716_s27, 7  ;;  %s3591_s6 = sld [smem:[#allocation32_spill]] }
  0x12   : > { %3590 = sst [smem:[#allocation7_spill]] %s2721_s28  ;;  %s420_s3 = sshrl.u32 %s2721_s28, 9 }
  0x13   : > { %s423_s29 = sand.u32 511, %s2721_s28   ;;  %p2541_p3 = scmp.gt.s32.totalorder %s420_s3, 0 }
  0x14   : > { %s424_s30 = sshrl.u32 %s423_s29, 7  ;;  %s425_s8 = sand.u32 127, %s423_s29  }
  0x15   : > { %s2725_s9 = sshrl.u32 %s424_s30, 2  ;;  %s3643_s3 = smov (%p2541_p3, %s420_s3), 0 }
  0x16   : > { %s428_s10 = sand.u32 3, %s424_s30   ;;  %s435_s11 = sand.u32 255, %s425_s8 }
  0x17   : > { %s426_s14 = scalar_lea.vmem %s3591_s6, %s3643_s3  ;;  %v431_v1 = vstv %s428_s10  ;;  %s2733_s15 = sor.u32 256, %s435_s11 }
  0x18   : > { %s429_s16 = scalar_lea.vmem %s426_s14, %s2725_s9  ;;  %v2736_v2 = vshll.u32 %v431_v1, 3  ;;  %s482_s17 = sadd.s32 16, %s2721_s28 }
  0x19   : > { %v430_v3 = vld [vmem:[%s429_s16] ss:$0 sm:$0xff]  ;;  %s483_s18 = sshrl.u32 %s482_s17, 9  ;;  %s486_s19 = sand.u32 511, %s482_s17  }
  0x1a   : > { %v433_v4 = vshra.s32 %v430_v3, %v2736_v2  ;;  %p2545_p4 = scmp.gt.s32.totalorder %s483_s18, 0  ;;  %s487_s20 = sshrl.u32 %s486_s19, 7 }
  0x1b   : > { %s488_s21 = sand.u32 127, %s486_s19   ;;  %s2740_s22 = sshrl.u32 %s487_s20, 2 }
  0x1c   : > { %v434_v5 = vand.u32 255, %v433_v4  ;;  %s3645_s18 = smov (%p2545_p4, %s483_s18), 0  ;;  %s491_s23 = sand.u32 3, %s487_s20  }
  0x1d   : > { %s498_s24 = sand.u32 255, %s488_s21  ;;  %s489_s30 = scalar_lea.vmem %s3591_s6, %s3645_s18  ;;  %v494_v6 = vstv %s491_s23 }
  0x1e   : > { %438 = vbcast.lane.b32.xlu0 %v434_v5, %s2733_s15  ;;  %s2749_s8 = sor.u32 256, %s498_s24  ;;  %s492_s10 = scalar_lea.vmem %s489_s30, %s2740_s22  ;;  %v2752_v7 = vshll.u32 %v494_v6, 3 }
  0x1f   : > { %3592 = sst [smem:[#allocation8_spill]] %s2749_s8  ;;  %s450_s11 = sadd.s32 8, %s2721_s28  ;;  %v493_v8 = vld [vmem:[%s492_s10] ss:$0 sm:$0xff] }
  0x20   : > { %s451_s12 = sshrl.u32 %s450_s11, 9  ;;  %s454_s13 = sand.u32 511, %s450_s11   ;;  %v496_v9 = vshra.s32 %v493_v8, %v2752_v7 }
  0x21   : > { %p2543_p5 = scmp.gt.s32.totalorder %s451_s12, 0  ;;  %s455_s14 = sshrl.u32 %s454_s13, 7 }
  0x22   : > { %s456_s16 = sand.u32 127, %s454_s13   ;;  %s2756_s17 = sshrl.u32 %s455_s14, 2  ;;  %v497_v10 = vand.u32 255, %v496_v9 }
  0x23   : > { %s3647_s12 = smov (%p2543_p5, %s451_s12), 0  ;;  %s459_s19 = sand.u32 3, %s455_s14  }
  0x24   : > { %s466_s20 = sand.u32 255, %s456_s16  ;;  %501 = vbcast.lane.b32.xlu1 %v497_v10, %s2749_s8  ;;  %s457_s24 = scalar_lea.vmem %s3591_s6, %s3647_s12  ;;  %v462_v11 = vstv %s459_s19 }
  0x25   : > { %s2765_s25 = sor.u32 256, %s466_s20  ;;  %s460_s29 = scalar_lea.vmem %s457_s24, %s2756_s17  ;;  %v2768_v12 = vshll.u32 %v462_v11, 3 }
  0x26   : > { %s514_s30 = sadd.s32 24, %s2721_s28  ;;  %v461_v13 = vld [vmem:[%s460_s29] ss:$0 sm:$0xff]  ;;  %s968_s23 = scalar_lea.vmem %s3532_s5, %s3647_s12 }
  0x27   : > { %s515_s10 = sshrl.u32 %s514_s30, 9  ;;  %s518_s11 = sand.u32 511, %s514_s30   ;;  %v464_v14 = vshra.s32 %v461_v13, %v2768_v12 }
  0x28   : > { %p2547_p6 = scmp.gt.s32.totalorder %s515_s10, 0  ;;  %s519_s13 = sshrl.u32 %s518_s11, 7 }
  0x29   : > { %s520_s14 = sand.u32 127, %s518_s11   ;;  %s2772_s16 = sshrl.u32 %s519_s13, 2  ;;  %v465_v15 = vand.u32 255, %v464_v14 }
  0x2a   : > { %s3649_s10 = smov (%p2547_p6, %s515_s10), 0  ;;  %s523_s19 = sand.u32 3, %s519_s13  }
  0x2b   : > { %s530_s20 = sand.u32 255, %s520_s14  ;;  %469 = vbcast.lane.b32.xlu0 %v465_v15, %s2765_s25  ;;  %s521_s24 = scalar_lea.vmem %s3591_s6, %s3649_s10  ;;  %v526_v16 = vstv %s523_s19 }
  0x2c   : > { %s2781_s29 = sor.u32 256, %s530_s20  ;;  %s524_s30 = scalar_lea.vmem %s521_s24, %s2772_s16  ;;  %v2784_v17 = vshll.u32 %v526_v16, 3 }
  0x2d   : > { %3593 = sst [smem:[#allocation9_spill]] %s2781_s29  ;;  %s546_s11 = sadd.s32 32, %s2721_s28  ;;  %v525_v18 = vld [vmem:[%s524_s30] ss:$0 sm:$0xff] }
  0x2e   : > { %s547_s26 = sshrl.u32 %s546_s11, 9  ;;  %s550_s7 = sand.u32 511, %s546_s11   ;;  %v528_v19 = vshra.s32 %v525_v18, %v2784_v17 }
  0x2f   : > { %p2549_p7 = scmp.gt.s32.totalorder %s547_s26, 0  ;;  %s551_s13 = sshrl.u32 %s550_s7, 7 }
  0x30   : > { %s552_s14 = sand.u32 127, %s550_s7   ;;  %s2788_s0 = sshrl.u32 %s551_s13, 2  ;;  %v529_v20 = vand.u32 255, %v528_v19 }
  0x31   : > { %s3651_s26 = smov (%p2549_p7, %s547_s26), 0  ;;  %s555_s19 = sand.u32 3, %s551_s13  }
  0x32   : > { %s562_s20 = sand.u32 255, %s552_s14  ;;  %533 = vbcast.lane.b32.xlu1 %v529_v20, %s2781_s29  ;;  %s553_s24 = scalar_lea.vmem %s3591_s6, %s3651_s26  ;;  %v558_v21 = vstv %s555_s19 }
  0x33   : > { %s2797_s30 = sor.u32 256, %s562_s20  ;;  %s556_s11 = scalar_lea.vmem %s553_s24, %s2788_s0  ;;  %v2800_v22 = vshll.u32 %v558_v21, 3 }
  0x34   : > { %3594 = sst [smem:[#allocation10_spill]] %s2797_s30  ;;  %s578_s7 = sadd.s32 40, %s2721_s28  ;;  %v557_v23 = vld [vmem:[%s556_s11] ss:$0 sm:$0xff] }
  0x35   : > { %s579_s1 = sshrl.u32 %s578_s7, 9  ;;  %s582_s2 = sand.u32 511, %s578_s7   ;;  %v560_v24 = vshra.s32 %v557_v23, %v2800_v22 }
  0x36   : > { %p2551_p8 = scmp.gt.s32.totalorder %s579_s1, 0  ;;  %s583_s13 = sshrl.u32 %s582_s2, 7 }
  0x37   : > { %s584_s14 = sand.u32 127, %s582_s2   ;;  %s2804_s27 = sshrl.u32 %s583_s13, 2  ;;  %v561_v25 = vand.u32 255, %v560_v24 }
  0x38   : > { %3595 = sst [smem:[#allocation11_spill]] %s2804_s27  ;;  %s3653_s1 = smov (%p2551_p8, %s579_s1), 0 }
  0x39   : > { %3596 = sst [smem:[#allocation12_spill]] %s3653_s1  ;;  %s587_s19 = sand.u32 3, %s583_s13   ;;  %565 = vbcast.lane.b32.xlu0 %v561_v25, %s2797_s30 }
  0x3a   : > { %s594_s20 = sand.u32 255, %s584_s14  ;;  %s585_s24 = scalar_lea.vmem %s3591_s6, %s3653_s1  ;;  %v590_v26 = vstv %s587_s19 }
  0x3b   : > { %s2813_s11 = sor.u32 256, %s594_s20  ;;  %s588_s7 = scalar_lea.vmem %s585_s24, %s2804_s27  ;;  %v2816_v27 = vshll.u32 %v590_v26, 3 }
  0x3c   : > { %3597 = sst [smem:[#allocation13_spill]] %s2813_s11  ;;  %s610_s2 = sadd.s32 48, %s2721_s28  ;;  %v589_v28 = vld [vmem:[%s588_s7] ss:$0 sm:$0xff] }
  0x3d   : > { %s611_s29 = sshrl.u32 %s610_s2, 9  ;;  %s614_s8 = sand.u32 511, %s610_s2   ;;  %v592_v29 = vshra.s32 %v589_v28, %v2816_v27 }
  0x3e   : > { %p2553_p9 = scmp.gt.s32.totalorder %s611_s29, 0  ;;  %s615_s13 = sshrl.u32 %s614_s8, 7 }
  0x3f   : > { %s616_s14 = sand.u32 127, %s614_s8   ;;  %s2820_s30 = sshrl.u32 %s615_s13, 2  ;;  %v593_v30 = vand.u32 255, %v592_v29 }
  0x40   : > { %3598 = sst [smem:[#allocation14_spill]] %s2820_s30  ;;  %s3655_s29 = smov (%p2553_p9, %s611_s29), 0 }
  0x41   : > { %3599 = sst [smem:[#allocation15_spill]] %s3655_s29  ;;  %s619_s19 = sand.u32 3, %s615_s13   ;;  %597 = vbcast.lane.b32.xlu1 %v593_v30, %s2813_s11 }
  0x42   : > { %s626_s20 = sand.u32 255, %s616_s14  ;;  %s617_s24 = scalar_lea.vmem %s3591_s6, %s3655_s29  ;;  %v622_v31 = vstv %s619_s19 }
  0x43   : > { %s2829_s7 = sor.u32 256, %s626_s20  ;;  %s620_s2 = scalar_lea.vmem %s617_s24, %s2820_s30  ;;  %v2832_v32 = vshll.u32 %v622_v31, 3 }
  0x44   : > { %3600 = sst [smem:[#allocation16_spill]] %s2829_s7  ;;  %s642_s8 = sadd.s32 56, %s2721_s28  ;;  %v621_v33 = vld [vmem:[%s620_s2] ss:$0 sm:$0xff] }
  0x45   : > { %s643_s27 = sshrl.u32 %s642_s8, 9  ;;  %s646_s1 = sand.u32 511, %s642_s8   ;;  %v624_v34 = vshra.s32 %v621_v33, %v2832_v32 }
  0x46   : > { %p2555_p10 = scmp.gt.s32.totalorder %s643_s27, 0  ;;  %s647_s13 = sshrl.u32 %s646_s1, 7 }
  0x47   : > { %s648_s14 = sand.u32 127, %s646_s1   ;;  %s2836_s11 = sshrl.u32 %s647_s13, 2  ;;  %v625_v35 = vand.u32 255, %v624_v34 }
  0x48   : > { %3601 = sst [smem:[#allocation17_spill]] %s2836_s11  ;;  %s3657_s27 = smov (%p2555_p10, %s643_s27), 0 }
  0x49   : > { %3602 = sst [smem:[#allocation18_spill]] %s3657_s27  ;;  %s651_s19 = sand.u32 3, %s647_s13   ;;  %629 = vbcast.lane.b32.xlu0 %v625_v35, %s2829_s7 }
  0x4a   : > { %s658_s20 = sand.u32 255, %s648_s14  ;;  %s649_s24 = scalar_lea.vmem %s3591_s6, %s3657_s27  ;;  %v654_v36 = vstv %s651_s19 }
  0x4b   : > { %s2845_s2 = sor.u32 256, %s658_s20  ;;  %s652_s8 = scalar_lea.vmem %s649_s24, %s2836_s11  ;;  %v2848_v37 = vshll.u32 %v654_v36, 3 }
  0x4c   : > { %3603 = sst [smem:[#allocation19_spill]] %s2845_s2  ;;  %s674_s1 = sadd.s32 64, %s2721_s28  ;;  %v653_v38 = vld [vmem:[%s652_s8] ss:$0 sm:$0xff] }
  0x4d   : > { %s675_s30 = sshrl.u32 %s674_s1, 9  ;;  %s678_s29 = sand.u32 511, %s674_s1   ;;  %v656_v39 = vshra.s32 %v653_v38, %v2848_v37 }
  0x4e   : > { %p2557_p11 = scmp.gt.s32.totalorder %s675_s30, 0  ;;  %s679_s13 = sshrl.u32 %s678_s29, 7 }
  0x4f   : > { %s680_s14 = sand.u32 127, %s678_s29   ;;  %s2852_s7 = sshrl.u32 %s679_s13, 2  ;;  %v657_v40 = vand.u32 255, %v656_v39 }
  0x50   : > { %3604 = sst [smem:[#allocation20_spill]] %s2852_s7  ;;  %s3659_s30 = smov (%p2557_p11, %s675_s30), 0 }
  0x51   : > { %3605 = sst [smem:[#allocation21_spill]] %s3659_s30  ;;  %s683_s19 = sand.u32 3, %s679_s13   ;;  %661 = vbcast.lane.b32.xlu1 %v657_v40, %s2845_s2 }
  0x52   : > { %s690_s20 = sand.u32 255, %s680_s14  ;;  %s681_s24 = scalar_lea.vmem %s3591_s6, %s3659_s30  ;;  %v686_v41 = vstv %s683_s19 }
  0x53   : > { %s2861_s8 = sor.u32 256, %s690_s20  ;;  %s684_s1 = scalar_lea.vmem %s681_s24, %s2852_s7  ;;  %v2864_v42 = vshll.u32 %v686_v41, 3 }
  0x54   : > { %3606 = sst [smem:[#allocation22_spill]] %s2861_s8  ;;  %s706_s29 = sadd.s32 72, %s2721_s28  ;;  %v685_v43 = vld [vmem:[%s684_s1] ss:$0 sm:$0xff] }
  0x55   : > { %s707_s11 = sshrl.u32 %s706_s29, 9  ;;  %s710_s27 = sand.u32 511, %s706_s29   ;;  %v688_v44 = vshra.s32 %v685_v43, %v2864_v42 }
  0x56   : > { %p2559_p12 = scmp.gt.s32.totalorder %s707_s11, 0  ;;  %s711_s13 = sshrl.u32 %s710_s27, 7 }
  0x57   : > { %s712_s14 = sand.u32 127, %s710_s27   ;;  %s2868_s2 = sshrl.u32 %s711_s13, 2  ;;  %v689_v45 = vand.u32 255, %v688_v44 }
  0x58   : > { %3607 = sst [smem:[#allocation23_spill]] %s2868_s2  ;;  %s3661_s11 = smov (%p2559_p12, %s707_s11), 0 }
  0x59   : > { %3608 = sst [smem:[#allocation24_spill]] %s3661_s11  ;;  %s715_s19 = sand.u32 3, %s711_s13   ;;  %693 = vbcast.lane.b32.xlu0 %v689_v45, %s2861_s8 }
  0x5a   : > { %s722_s20 = sand.u32 255, %s712_s14  ;;  %s713_s24 = scalar_lea.vmem %s3591_s6, %s3661_s11  ;;  %v718_v46 = vstv %s715_s19 }
  0x5b   : > { %s2877_s1 = sor.u32 256, %s722_s20  ;;  %s716_s29 = scalar_lea.vmem %s713_s24, %s2868_s2  ;;  %v2880_v47 = vshll.u32 %v718_v46, 3 }
  0x5c   : > { %3609 = sst [smem:[#allocation25_spill]] %s2877_s1  ;;  %s738_s27 = sadd.s32 80, %s2721_s28  ;;  %v717_v48 = vld [vmem:[%s716_s29] ss:$0 sm:$0xff] }
  0x5d   : > { %s739_s7 = sshrl.u32 %s738_s27, 9  ;;  %s742_s30 = sand.u32 511, %s738_s27   ;;  %v720_v49 = vshra.s32 %v717_v48, %v2880_v47 }
  0x5e   : > { %p2561_p13 = scmp.gt.s32.totalorder %s739_s7, 0  ;;  %s743_s13 = sshrl.u32 %s742_s30, 7 }
  0x5f   : > { %s744_s14 = sand.u32 127, %s742_s30   ;;  %s2884_s8 = sshrl.u32 %s743_s13, 2  ;;  %v721_v50 = vand.u32 255, %v720_v49 }
  0x60   : > { %3610 = sst [smem:[#allocation26_spill]] %s2884_s8  ;;  %s3663_s7 = smov (%p2561_p13, %s739_s7), 0 }
  0x61   : > { %s747_s19 = sand.u32 3, %s743_s13   ;;  %s754_s20 = sand.u32 255, %s744_s14  ;;  %725 = vbcast.lane.b32.xlu1 %v721_v50, %s2877_s1 }
  0x62   : > { %s745_s24 = scalar_lea.vmem %s3591_s6, %s3663_s7  ;;  %v750_v51 = vstv %s747_s19  ;;  %s2893_s29 = sor.u32 256, %s754_s20 }
  0x63   : > { %3611 = sst [smem:[#allocation27_spill]] %s2893_s29  ;;  %s748_s27 = scalar_lea.vmem %s745_s24, %s2884_s8  ;;  %v2896_v52 = vshll.u32 %v750_v51, 3 }
  0x64   : > { %s770_s30 = sadd.s32 88, %s2721_s28  ;;  %v749_v53 = vld [vmem:[%s748_s27] ss:$0 sm:$0xff]  ;;  %s937_s8 = scalar_lea.vmem %s3532_s5, %s3643_s3 }
  0x65   : > { %s771_s2 = sshrl.u32 %s770_s30, 9  ;;  %s774_s11 = sand.u32 511, %s770_s30   ;;  %v752_v54 = vshra.s32 %v749_v53, %v2896_v52 }
  0x66   : > { %p2563_p0 = scmp.gt.s32.totalorder %s771_s2, 0  ;;  %s775_s13 = sshrl.u32 %s774_s11, 7 }
  0x67   : > { %s776_s14 = sand.u32 127, %s774_s11   ;;  %s2900_s21 = sshrl.u32 %s775_s13, 2  ;;  %v753_v55 = vand.u32 255, %v752_v54 }
  0x68   : > { %s3665_s2 = smov (%p2563_p0, %s771_s2), 0  ;;  %s779_s19 = sand.u32 3, %s775_s13  }
  0x69   : > { %s786_s20 = sand.u32 255, %s776_s14  ;;  %757 = vbcast.lane.b32.xlu0 %v753_v55, %s2893_s29  ;;  %s777_s27 = scalar_lea.vmem %s3591_s6, %s3665_s2  ;;  %v782_v56 = vstv %s779_s19 }
  0x6a   : > { %s2909_s11 = sor.u32 256, %s786_s20  ;;  %s780_s30 = scalar_lea.vmem %s777_s27, %s2900_s21  ;;  %v2912_v57 = vshll.u32 %v782_v56, 3 }
  0x6b   : > { %3612 = sst [smem:[#allocation28_spill]] %s2909_s11  ;;  %v781_v58 = vld [vmem:[%s780_s30] ss:$0 sm:$0xff]  ;;  %s940_s13 = scalar_lea.vmem %s937_s8, %s2725_s9 }
  0x6c   : > { %v784_v59 = vshra.s32 %v781_v58, %v2912_v57  ;;  %v941_v60 = vld [vmem:[%s940_s13] ss:$0 sm:$0xff]  ;;  %s971_s19 = scalar_lea.vmem %s968_s23, %s2756_s17  ;;  %s1448_s28 = scalar_lea.vmem %s3531_s4, %s3643_s3 }
  0x6d   : > { %v944_v61 = vshra.s32 %v941_v60, %v2736_v2  ;;  %v972_v62 = vld [vmem:[%s971_s19] ss:$0 sm:$0xff]  ;;  %s1451_s1 = scalar_lea.vmem %s1448_s28, %s2725_s9  ;;  %s1479_s29 = scalar_lea.vmem %s3531_s4, %s3647_s12 }
  0x6e   : > { %v785_v63 = vand.u32 255, %v784_v59  ;;  %v975_v1 = vshra.s32 %v972_v62, %v2768_v12  ;;  %v1452_v3 = vld [vmem:[%s1451_s1] ss:$0 sm:$0xff]  ;;  %s1482_s30 = scalar_lea.vmem %s1479_s29, %s2756_s17  ;;  %s1000_s3 = scalar_lea.vmem %s3532_s5, %s3645_s18 }
  0x6f   : > { %v945_v4 = vand.u32 255, %v944_v61  ;;  %v1455_v5 = vshra.s32 %v1452_v3, %v2736_v2  ;;  %v1483_v6 = vld [vmem:[%s1482_s30] ss:$0 sm:$0xff]  ;;  %s1003_s9 = scalar_lea.vmem %s1000_s3, %s2740_s22  ;;  %s1511_s19 = scalar_lea.vmem %s3531_s4, %s3645_s18 }
  0x70   : > { %789 = vbcast.lane.b32.xlu1 %v785_v63, %s2909_s11  ;;  %v976_v8 = vand.u32 255, %v975_v1  ;;  %v1486_v9 = vshra.s32 %v1483_v6, %v2768_v12  ;;  %v1004_v10 = vld [vmem:[%s1003_s9] ss:$0 sm:$0xff]  ;;  %s1514_s17 = scalar_lea.vmem %s1511_s19, %s2740_s22  ;;  %s1032_s28 = scalar_lea.vmem %s3532_s5, %s3649_s10 }
  0x71   : > { %949 = vbcast.lane.b32.xlu0 %v945_v4, %s2733_s15  ;;  %v1456_v2 = vand.u32 255, %v1455_v5  ;;  %v1007_v11 = vshra.s32 %v1004_v10, %v2752_v7  ;;  %v1515_v13 = vld [vmem:[%s1514_s17] ss:$0 sm:$0xff]  ;;  %s3613_s18 = sld [smem:[#allocation12_spill]]  ;;  %s1035_s1 = scalar_lea.vmem %s1032_s28, %s2772_s16 }
  0x72   : > { %s1543_s29 = scalar_lea.vmem %s3531_s4, %s3649_s10  ;;  %v1036_v12 = vld [vmem:[%s1035_s1] ss:$0 sm:$0xff]  ;;  %s1064_s14 = scalar_lea.vmem %s3532_s5, %s3651_s26  ;;  %v1487_v16 = vand.u32 255, %v1486_v9  ;;  %v1518_v18 = vshra.s32 %v1515_v13, %v2752_v7 }
  0x73   : > { %s1546_s30 = scalar_lea.vmem %s1543_s29, %s2772_s16  ;;  %s3614_s3 = sld [smem:[#allocation11_spill]]  ;;  %v1039_v14 = vshra.s32 %v1036_v12, %v2784_v17  ;;  %v1008_v21 = vand.u32 255, %v1007_v11 }
  0x74   : > { %v1547_v15 = vld [vmem:[%s1546_s30] ss:$0 sm:$0xff]  ;;  %s1067_s9 = scalar_lea.vmem %s1064_s14, %s2788_s0  ;;  %s1575_s19 = scalar_lea.vmem %s3531_s4, %s3651_s26  ;;  %980 = vbcast.lane.b32.xlu1 %v976_v8, %s2765_s25  ;;  %v1519_v28 = vand.u32 255, %v1518_v18 }
  0x75   : > { %s3615_s10 = sld [smem:[#allocation15_spill]]  ;;  %v1550_v19 = vshra.s32 %v1547_v15, %v2784_v17  ;;  %v1068_v20 = vld [vmem:[%s1067_s9] ss:$0 sm:$0xff]  ;;  %s1578_s16 = scalar_lea.vmem %s1575_s19, %s2788_s0  ;;  %1460 = vbcast.lane.b32.xlu0 %v1456_v2, %s2733_s15 }
  0x76   : > { %s3616_s28 = sld [smem:[#allocation14_spill]]  ;;  %v1071_v23 = vshra.s32 %v1068_v20, %v2800_v22  ;;  %v1579_v24 = vld [vmem:[%s1578_s16] ss:$0 sm:$0xff] }
  0x77   : > { %s1096_s24 = scalar_lea.vmem %s3532_s5, %s3613_s18  ;;  %s3617_s26 = sld [smem:[#allocation8_spill]]  ;;  %v1582_v7 = vshra.s32 %v1579_v24, %v2800_v22  ;;  %v1040_v22 = vand.u32 255, %v1039_v14  ;;  %v1551_v31 = vand.u32 255, %v1550_v19 }
  0x78   : > { %s3618_s29 = sld [smem:[#allocation18_spill]]  ;;  %s1607_s30 = scalar_lea.vmem %s3531_s4, %s3613_s18  ;;  %1491 = vbcast.lane.b32.xlu1 %v1487_v16, %s2765_s25  ;;  %v1072_v33 = vand.u32 255, %v1071_v23 }
  0x79   : > { %s1099_s1 = scalar_lea.vmem %s1096_s24, %s3614_s3  ;;  %s1610_s0 = scalar_lea.vmem %s1607_s30, %s3614_s3  ;;  %v1583_v35 = vand.u32 255, %v1582_v7 }
  0x7a   : > { %v1100_v17 = vld [vmem:[%s1099_s1] ss:$0 sm:$0xff]  ;;  %s3619_s15 = sld [smem:[#allocation17_spill]] }
  0x7b   : > { %v1103_v25 = vshra.s32 %v1100_v17, %v2816_v27  ;;  %v1611_v26 = vld [vmem:[%s1610_s0] ss:$0 sm:$0xff]  ;;  %s1639_s14 = scalar_lea.vmem %s3531_s4, %s3615_s10  ;;  %s3620_s9 = sld [smem:[#allocation9_spill]] }
  0x7c   : > { %s3621_s18 = sld [smem:[#allocation21_spill]]  ;;  %v1614_v29 = vshra.s32 %v1611_v26, %v2816_v27  ;;  %s1128_s3 = scalar_lea.vmem %s3532_s5, %s3615_s10 }
  0x7d   : > { %s1642_s19 = scalar_lea.vmem %s1639_s14, %s3616_s28  ;;  %s3622_s16 = sld [smem:[#allocation24_spill]]  ;;  %1012 = vbcast.lane.b32.xlu0 %v1008_v21, %s3617_s26  ;;  %1523 = vbcast.lane.b32.xlu1 %v1519_v28, %s3617_s26  ;;  %v1104_v36 = vand.u32 255, %v1103_v25 }
  0x7e   : > { %v1643_v30 = vld [vmem:[%s1642_s19] ss:$0 sm:$0xff]  ;;  %s1160_s25 = scalar_lea.vmem %s3532_s5, %s3618_s29  ;;  %s1131_s24 = scalar_lea.vmem %s1128_s3, %s3616_s28  ;;  %v1615_v40 = vand.u32 255, %v1614_v29 }
  0x7f   : > { %v1646_v27 = vshra.s32 %v1643_v30, %v2832_v32  ;;  %s3623_s1 = sld [smem:[#allocation20_spill]]  ;;  %s1671_s0 = scalar_lea.vmem %s3531_s4, %s3618_s29  ;;  %v1132_v34 = vld [vmem:[%s1131_s24] ss:$0 sm:$0xff] }
  0x80   : > { %s3624_s10 = sld [smem:[#allocation10_spill]]  ;;  %s1163_s8 = scalar_lea.vmem %s1160_s25, %s3619_s15  ;;  %v1135_v38 = vshra.s32 %v1132_v34, %v2832_v32 }
  0x81   : > { %1044 = vbcast.lane.b32.xlu0 %v1040_v22, %s3620_s9  ;;  %s3625_s22 = sld [smem:[#allocation23_spill]]  ;;  %s1674_s11 = scalar_lea.vmem %s1671_s0, %s3619_s15  ;;  %1555 = vbcast.lane.b32.xlu1 %v1551_v31, %s3620_s9  ;;  %v1164_v39 = vld [vmem:[%s1163_s8] ss:$0 sm:$0xff]  ;;  %v1647_v45 = vand.u32 255, %v1646_v27 }
  0x82   : > { %s1192_s12 = scalar_lea.vmem %s3532_s5, %s3621_s18  ;;  %s1703_s26 = scalar_lea.vmem %s3531_s4, %s3621_s18  ;;  %v1136_v32 = vand.u32 255, %v1135_v38  ;;  %v1167_v41 = vshra.s32 %v1164_v39, %v2848_v37  ;;  %v1675_v43 = vld [vmem:[%s1674_s11] ss:$0 sm:$0xff] }
  0x83   : > { %s3626_s3 = sld [smem:[#allocation26_spill]]  ;;  %s1224_s25 = scalar_lea.vmem %s3532_s5, %s3622_s16  ;;  %v1678_v46 = vshra.s32 %v1675_v43, %v2848_v37 }
  0x84   : > { %s3627_s20 = sld [smem:[#allocation7_spill]]  ;;  %s1735_s30 = scalar_lea.vmem %s3531_s4, %s3622_s16  ;;  %v1168_v48 = vand.u32 255, %v1167_v41 }
  0x85   : > { %s1256_s14 = scalar_lea.vmem %s3532_s5, %s3663_s7  ;;  %s1195_s18 = scalar_lea.vmem %s1192_s12, %s3623_s1  ;;  %v1679_v37 = vand.u32 255, %v1678_v46 }
  0x86   : > { %s3628_s24 = sld [smem:[#allocation13_spill]]  ;;  %s3039_s23 = scalar_lea.vmem %s1703_s26, %s3623_s1  ;;  %1076 = vbcast.lane.b32.xlu0 %v1072_v33, %s3624_s10  ;;  %1587 = vbcast.lane.b32.xlu1 %v1583_v35, %s3624_s10  ;;  %v1196_v44 = vld [vmem:[%s1195_s18] ss:$0 sm:$0xff] }
  0x87   : > { %s3044_s28 = scalar_lea.vmem %s1224_s25, %s3625_s22  ;;  %s3047_s15 = scalar_lea.vmem %s1735_s30, %s3625_s22  ;;  %v1199_v49 = vshra.s32 %v1196_v44, %v2864_v42  ;;  %v1707_v50 = vld [vmem:[%s3039_s23] ss:$0 sm:$0xff] }
  0x88   : > { %s1767_s26 = scalar_lea.vmem %s3531_s4, %s3663_s7  ;;  %s3629_s19 = sld [smem:[#allocation16_spill]]  ;;  %v1228_v51 = vld [vmem:[%s3044_s28] ss:$0 sm:$0xff]  ;;  %v1710_v53 = vshra.s32 %v1707_v50, %v2864_v42 }
  0x89   : > { %s3050_s6 = scalar_lea.vmem %s1256_s14, %s3626_s3  ;;  %s1288_s10 = scalar_lea.vmem %s3532_s5, %s3665_s2  ;;  %v1200_v54 = vand.u32 255, %v1199_v49  ;;  %v1231_v55 = vshra.s32 %v1228_v51, %v2880_v47  ;;  %v1739_v56 = vld [vmem:[%s3047_s15] ss:$0 sm:$0xff] }
  0x8a   : > { %s802_s9 = sadd.s32 96, %s3627_s20  ;;  %s1799_s29 = scalar_lea.vmem %s3531_s4, %s3665_s2  ;;  %v1260_v58 = vld [vmem:[%s3050_s6] ss:$0 sm:$0xff]  ;;  %v1711_v42 = vand.u32 255, %v1710_v53  ;;  %v1742_v59 = vshra.s32 %v1739_v56, %v2880_v47 }
  0x8b   : > { %s803_s16 = sshrl.u32 %s802_s9, 9  ;;  %s806_s0 = sand.u32 511, %s802_s9   ;;  %v1232_v60 = vand.u32 255, %v1231_v55  ;;  %v1263_v61 = vshra.s32 %v1260_v58, %v2896_v52 }
  0x8c   : > { %p2565_p1 = scmp.gt.s32.totalorder %s803_s16, 0  ;;  %1108 = vbcast.lane.b32.xlu0 %v1104_v36, %s3628_s24  ;;  %s807_s7 = sshrl.u32 %s806_s0, 7  ;;  %1619 = vbcast.lane.b32.xlu1 %v1615_v40, %s3628_s24  ;;  %v1743_v47 = vand.u32 255, %v1742_v59 }
  0x8d   : > { %s808_s27 = sand.u32 127, %s806_s0   ;;  %s3073_s11 = scalar_lea.vmem %s1767_s26, %s3626_s3  ;;  %v1264_v4 = vand.u32 255, %v1263_v61 }
  0x8e   : > { %s3667_s16 = smov (%p2565_p1, %s803_s16), 0  ;;  %s3076_s30 = scalar_lea.vmem %s1288_s10, %s2900_s21  ;;  %v1771_v62 = vld [vmem:[%s3073_s11] ss:$0 sm:$0xff] }
  0x8f   : > { %s3630_s13 = sld [smem:[#allocation19_spill]]  ;;  %s3082_s2 = scalar_lea.vmem %s1799_s29, %s2900_s21  ;;  %v1292_v63 = vld [vmem:[%s3076_s30] ss:$0 sm:$0xff]  ;;  %v1774_v3 = vshra.s32 %v1771_v62, %v2896_v52 }
  0x90   : > { %1140 = vbcast.lane.b32.xlu0 %v1136_v32, %s3629_s19  ;;  %s3084_s14 = sshrl.u32 %s807_s7, 2  ;;  %s3087_s18 = sand.u32 3, %s807_s7   ;;  %1651 = vbcast.lane.b32.xlu1 %v1647_v45, %s3629_s19  ;;  %v1295_v5 = vshra.s32 %v1292_v63, %v2912_v57  ;;  %v1803_v6 = vld [vmem:[%s3082_s2] ss:$0 sm:$0xff] }
  0x91   : > { %s818_s3 = sand.u32 255, %s808_s27  ;;  %s3631_s0 = sld [smem:[#allocation32_spill]]  ;;  %v814_v1 = vstv %s3087_s18  ;;  %v1775_v9 = vand.u32 255, %v1774_v3  ;;  %v1806_v10 = vshra.s32 %v1803_v6, %v2912_v57 }
  0x92   : > { %s834_s12 = sadd.s32 104, %s3627_s20  ;;  %s3632_s26 = sld [smem:[#allocation22_spill]]  ;;  %v815_v8 = vshll.u32 %v814_v1, 3  ;;  %v1296_v2 = vand.u32 255, %v1295_v5 }
  0x93   : > { %s835_s21 = sshrl.u32 %s834_s12, 9  ;;  %s838_s23 = sand.u32 511, %s834_s12   ;;  %v1807_v57 = vand.u32 255, %v1806_v10 }
  0x94   : > { %s3099_s28 = sor.u32 256, %s818_s3  ;;  %p2567_p2 = scmp.gt.s32.totalorder %s835_s21, 0 }
  0x95   : > { %1172 = vbcast.lane.b32.xlu0 %v1168_v48, %s3630_s13  ;;  %s1320_s22 = scalar_lea.vmem %s3532_s5, %s3667_s16  ;;  %s1831_s25 = scalar_lea.vmem %s3531_s4, %s3667_s16  ;;  %1683 = vbcast.lane.b32.xlu1 %v1679_v37, %s3630_s13 }
  0x96   : > { %s839_s29 = sshrl.u32 %s838_s23, 7  ;;  %s840_s7 = sand.u32 127, %s838_s23   ;;  %v502_v55 = vpop.permute.xlu1 %501 }
  0x97   : > { %s809_s1 = scalar_lea.vmem %s3631_s0, %s3667_s16  ;;  %s3669_s21 = smov (%p2567_p2, %s835_s21), 0  ;;  %vm505_vm5 = vcmp.ne.s32.totalorder %v502_v55, 0 }
  0x98   : > { %s3633_s15 = sld [smem:[#allocation25_spill]]  ;;  %s812_s6 = scalar_lea.vmem %s809_s1, %s3084_s14 }
  0x99   : > { %1204 = vbcast.lane.b32.xlu0 %v1200_v54, %s3632_s26  ;;  %s3119_s16 = scalar_lea.vmem %s1320_s22, %s3084_s14  ;;  %s3124_s27 = scalar_lea.vmem %s1831_s25, %s3084_s14  ;;  %1715 = vbcast.lane.b32.xlu1 %v1711_v42, %s3632_s26  ;;  %v813_v52 = vld [vmem:[%s812_s6] ss:$0 sm:$0xff]  ;;  %v439_v54 = vpop.permute.xlu0 %438 }
  0x9a   : > { %s3126_s13 = sshrl.u32 %s839_s29, 2  ;;  %s3128_s3 = sand.u32 3, %s839_s29   ;;  %v816_v11 = vshra.s32 %v813_v52, %v815_v8  ;;  %v1324_v13 = vld [vmem:[%s3119_s16] ss:$0 sm:$0xff]  ;;  %vm442_vm0 = vcmp.ne.s32.totalorder %v439_v54, 0 }
  0x9b   : > { %s3130_s24 = sand.u32 255, %s840_s7  ;;  %s841_s30 = scalar_lea.vmem %s3631_s0, %s3669_s21  ;;  %v846_v12 = vstv %s3128_s3  ;;  %v1835_v14 = vld [vmem:[%s3124_s27] ss:$0 sm:$0xff]  ;;  %v1327_v15 = vshra.s32 %v1324_v13, %v815_v8 }
  0x9c   : > { %s866_s18 = sadd.s32 112, %s3627_s20  ;;  %s3634_s14 = sld [smem:[#allocation27_spill]]  ;;  %v847_v16 = vshll.u32 %v846_v12, 3  ;;  %v817_v18 = vand.u32 255, %v816_v11  ;;  %v1838_v19 = vshra.s32 %v1835_v14, %v815_v8 }
  0x9d   : > { %s867_s1 = sshrl.u32 %s866_s18, 9  ;;  %s3142_s12 = sand.u32 511, %s866_s18   ;;  %v1328_v24 = vand.u32 255, %v1327_v15  ;;  %v470_v56 = vpop.permute.xlu0 %469 }
  0x9e   : > { %1236 = vbcast.lane.b32.xlu0 %v1232_v60, %s3633_s15  ;;  %p2569_p3 = scmp.gt.s32.totalorder %s867_s1, 0  ;;  %s871_s23 = sshrl.u32 %s3142_s12, 7  ;;  %1747 = vbcast.lane.b32.xlu1 %v1743_v47, %s3633_s15  ;;  %v1839_v17 = vand.u32 255, %v1838_v19  ;;  %vm473_vm2 = vcmp.ne.s32.totalorder %v470_v56, 0 }
  0x9f   : > { %s1352_s8 = scalar_lea.vmem %s3532_s5, %s3669_s21  ;;  %s1863_s2 = scalar_lea.vmem %s3531_s4, %s3669_s21 }
  0xa0   : > { %s3671_s1 = smov (%p2569_p3, %s867_s1), 0  ;;  %s3635_s17 = sld [smem:[#allocation28_spill]] }
  0xa1   : > { %s844_s25 = scalar_lea.vmem %s841_s30, %s3126_s13  ;;  %s3161_s29 = sshrl.u32 %s871_s23, 2 }
  0xa2   : > { %1268 = vbcast.lane.b32.xlu0 %v1264_v4, %s3634_s14  ;;  %s1355_s21 = scalar_lea.vmem %s1352_s8, %s3126_s13  ;;  %s873_s6 = scalar_lea.vmem %s3631_s0, %s3671_s1  ;;  %1779 = vbcast.lane.b32.xlu1 %v1775_v9, %s3634_s14  ;;  %v845_v20 = vld [vmem:[%s844_s25] ss:$0 sm:$0xff] }
  0xa3   : > { %s1866_s11 = scalar_lea.vmem %s1863_s2, %s3126_s13  ;;  %s875_s9 = sand.u32 3, %s871_s23   ;;  %v1356_v21 = vld [vmem:[%s1355_s21] ss:$0 sm:$0xff]  ;;  %v848_v7 = vshra.s32 %v845_v20, %v847_v16 }
  0xa4   : > { %s876_s16 = scalar_lea.vmem %s873_s6, %s3161_s29  ;;  %s1384_s18 = scalar_lea.vmem %s3532_s5, %s3671_s1  ;;  %v878_v23 = vstv %s875_s9  ;;  %v1359_v25 = vshra.s32 %v1356_v21, %v847_v16  ;;  %v1867_v26 = vld [vmem:[%s1866_s11] ss:$0 sm:$0xff]  ;;  %v3208_v58 = vpop.permute.xlu1 %533 }
  0xa5   : > { %s1895_s14 = scalar_lea.vmem %s3531_s4, %s3671_s1  ;;  %s898_s23 = sadd.s32 120, %s3627_s20  ;;  %v879_v28 = vshll.u32 %v878_v23, 3  ;;  %v877_v29 = vld [vmem:[%s876_s16] ss:$0 sm:$0xff]  ;;  %v849_v22 = vand.u32 255, %v848_v7  ;;  %v1870_v30 = vshra.s32 %v1867_v26, %v847_v16  ;;  %vm537_vm8 = vcmp.ne.s32.totalorder %v3208_v58, 0 }
  0xa6   : > { %1300 = vbcast.lane.b32.xlu0 %v1296_v2, %s3635_s17  ;;  %s899_s26 = sshrl.u32 %s898_s23, 9  ;;  %s3182_s19 = sand.u32 511, %s898_s23   ;;  %1811 = vbcast.lane.b32.xlu1 %v1807_v57, %s3635_s17  ;;  %v1360_v27 = vand.u32 255, %v1359_v25 }
  0xa7   : > { %p2571_p4 = scmp.gt.s32.totalorder %s899_s26, 0  ;;  %s903_s8 = sshrl.u32 %s3182_s19, 7  ;;  %v880_v31 = vshra.s32 %v877_v29, %v879_v28  ;;  %v1871_v36 = vand.u32 255, %v1870_v30 }
  0xa8   : > { %s872_s22 = sand.u32 127, %s3142_s12   ;;  %s1387_s10 = scalar_lea.vmem %s1384_s18, %s3161_s29 }
  0xa9   : > { %s3673_s26 = smov (%p2571_p4, %s899_s26), 0  ;;  %s1898_s20 = scalar_lea.vmem %s1895_s14, %s3161_s29  ;;  %v1388_v33 = vld [vmem:[%s1387_s10] ss:$0 sm:$0xff]  ;;  %v881_v40 = vand.u32 255, %v880_v31 }
  0xaa   : > { %821 = vbcast.lane.b32.xlu0 %v817_v18, %s3099_s28  ;;  %s907_s1 = sand.u32 3, %s903_s8   ;;  %s905_s25 = scalar_lea.vmem %s3631_s0, %s3673_s26  ;;  %1332 = vbcast.lane.b32.xlu1 %v1328_v24, %s3099_s28  ;;  %v1899_v35 = vld [vmem:[%s1898_s20] ss:$0 sm:$0xff]  ;;  %v1391_v38 = vshra.s32 %v1388_v33, %v879_v28 }
  0xab   : > { %s906_s12 = sshrl.u32 %s903_s8, 2  ;;  %s1416_s15 = scalar_lea.vmem %s3532_s5, %s3673_s26  ;;  %v910_v34 = vstv %s907_s1  ;;  %v1902_v32 = vshra.s32 %v1899_v35, %v879_v28  ;;  %v3210_v42 = vpop.permute.xlu0 %565 }
  0xac   : > { %s852_s6 = sor.u32 256, %s3130_s24  ;;  %s882_s29 = sand.u32 255, %s872_s22  ;;  %v911_v39 = vshll.u32 %v910_v34, 3  ;;  %v1392_v44 = vand.u32 255, %v1391_v38  ;;  %vm569_vm11 = vcmp.ne.s32.totalorder %v3210_v42, 0 }
  0xad   : > { %s908_s11 = scalar_lea.vmem %s905_s25, %s906_s12  ;;  %s1419_s0 = scalar_lea.vmem %s1416_s15, %s906_s12  ;;  %v1903_v46 = vand.u32 255, %v1902_v32 }
  0xae   : > { %1843 = vbcast.lane.b32.xlu0 %v1839_v17, %s3099_s28  ;;  %s1927_s3 = scalar_lea.vmem %s3531_s4, %s3673_s26  ;;  %853 = vbcast.lane.b32.xlu1 %v849_v22, %s852_s6  ;;  %v909_v41 = vld [vmem:[%s908_s11] ss:$0 sm:$0xff]  ;;  %s884_s28 = sor.u32 256, %s882_s29 }
  0xaf   : > { %v1420_v43 = vld [vmem:[%s1419_s0] ss:$0 sm:$0xff]  ;;  %s1930_s24 = scalar_lea.vmem %s1927_s3, %s906_s12  ;;  %s904_s30 = sand.u32 127, %s3182_s19   ;;  %v912_v45 = vshra.s32 %v909_v41, %v911_v39 }
  0xb0   : > { %v1423_v48 = vshra.s32 %v1420_v43, %v911_v39  ;;  %v1931_v49 = vld [vmem:[%s1930_s24] ss:$0 sm:$0xff]  ;;  %s914_s18 = sand.u32 255, %s904_s30  ;;  %s3636_s27 = sld [smem:[#allocation6_spill]] }
  0xb1   : > { %v913_v50 = vand.u32 255, %v912_v45  ;;  %v1934_v51 = vshra.s32 %v1931_v49, %v911_v39  ;;  %s916_s13 = sor.u32 256, %s914_s18  ;;  %s3637_s8 = sld [smem:[#allocation31_spill]] }
  0xb2   : > { %1364 = vbcast.lane.b32.xlu0 %v1360_v27, %s852_s6  ;;  %1875 = vbcast.lane.b32.xlu1 %v1871_v36, %s852_s6  ;;  %v1424_v37 = vand.u32 255, %v1423_v48  ;;  %s3638_s1 = sld [smem:[#allocation30_spill]] }
  0xb3   : > { %v1935_v53 = vand.u32 255, %v1934_v51  ;;  %v3212_v59 = vpop.permute.xlu1 %597  ;;  %s3639_s12 = sld [smem:[#allocation29_spill]] }
  0xb4   : > { %vm601_vm14 = vcmp.ne.s32.totalorder %v3212_v59, 0  ;;  %s3640_s29 = sld [smem:[#allocation33_spill]] }
  0xb6   : > { %885 = vbcast.lane.b32.xlu0 %v881_v40, %s884_s28  ;;  %1396 = vbcast.lane.b32.xlu1 %v1392_v44, %s884_s28  ;;  %s2532_s14 = sshll.u32 %s3636_s27, 4  ;;  %p413_p6 = scmp.lt.s32.totalorder %s3636_s27, 1 }
  0xb7   : > { %p360_p5 = scmp.lt.s32.totalorder %s2532_s14, 31 }
  0xb8   : > { %s3677_s27 = smov (!%p413_p6, %s3636_s27), 1 }
  0xb9   : > { %s3675_s14 = smov (!%p360_p5, %s2532_s14), 31  ;;  %s2538_s7 = sshll.u32 %s3677_s27, 1 }
  0xba   : > { %1907 = vbcast.lane.b32.xlu0 %v1903_v46, %s884_s28  ;;  %917 = vbcast.lane.b32.xlu1 %v913_v50, %s916_s13  ;;  %s2533_s23 = sshll.u32 %s3675_s14, 3  ;;  %s416_s11 = scalar_lea.vmem %s3640_s29, %s2538_s7 }
  0xbb   : > { %v3215_v60 = vpop.permute.xlu0 %629  ;;  %s3228_s22 = scalar_lea.vmem %s3637_s8, %s2533_s23  ;;  %s3233_s2 = scalar_lea.vmem %s3638_s1, %s2533_s23 }
  0xbc   : > { %v419_v47 = vld [vmem:[%s3228_s22] sm:$0xff]  ;;  %s3242_s21 = scalar_lea.vmem %s3639_s12, %s2533_s23  ;;  %v2542_v8 = vld [vmem:[%s3228_s22 + $0x8] sm:$0xff]  ;;  %v2544_v18 = vld [vmem:[%s3228_s22 + $0x10] sm:$0xff] }
  0xbd   : > { %v930_v4 = vld [vmem:[%s3233_s2] sm:$0xff]  ;;  %v443_v6 = vsel %vm442_vm0, %v419_v47, %v2708_v0  ;;  %v2575_v9 = vld [vmem:[%s3233_s2 + $0x8] sm:$0xff]  ;;  %v474_v12 = vsel %vm473_vm2, %v2542_v8, %v2708_v0  ;;  %v2577_v20 = vld [vmem:[%s3233_s2 + $0x10] sm:$0xff]  ;;  %v506_v7 = vsel %vm505_vm5, %v2544_v18, %v2708_v0 }
  0xbe   : > { %1428 = vbcast.lane.b32.xlu0 %v1424_v37, %s916_s13  ;;  %1939 = vbcast.lane.b32.xlu1 %v1935_v53, %s916_s13  ;;  %v1441_v2 = vld [vmem:[%s3242_s21] sm:$0xff]  ;;  %v2608_v15 = vld [vmem:[%s3242_s21 + $0x8] sm:$0xff] }
  0xbf   : > { %v2610_v25 = vld [vmem:[%s3242_s21 + $0x10] sm:$0xff]  ;;  %v2546_v26 = vld [vmem:[%s3228_s22 + $0x18] sm:$0xff]  ;;  %v2548_v36 = vld [vmem:[%s3228_s22 + $0x20] sm:$0xff] }
  0xc0   : > { %v2579_v29 = vld [vmem:[%s3233_s2 + $0x18] sm:$0xff]  ;;  %v538_v33 = vsel %vm537_vm8, %v2546_v26, %v2708_v0  ;;  %v2581_v39 = vld [vmem:[%s3233_s2 + $0x20] sm:$0xff]  ;;  %v570_v44 = vsel %vm569_vm11, %v2548_v36, %v2708_v0  ;;  %v2550_v48 = vld [vmem:[%s3228_s22 + $0x28] sm:$0xff] }
  0xc1   : > { %v2612_v35 = vld [vmem:[%s3242_s21 + $0x18] sm:$0xff]  ;;  %v2614_v46 = vld [vmem:[%s3242_s21 + $0x20] sm:$0xff]  ;;  %v2583_v50 = vld [vmem:[%s3233_s2 + $0x28] sm:$0xff]  ;;  %v602_v55 = vsel %vm601_vm14, %v2550_v48, %v2708_v0 }
  0xc2   : > { %v2616_v58 = vld [vmem:[%s3242_s21 + $0x28] sm:$0xff]  ;;  %v2552_v42 = vld [vmem:[%s3228_s22 + $0x30] sm:$0xff]  ;;  %v2620_v18 = vld [vmem:[%s3242_s21 + $0x38] sm:$0xff] }
  0xc3   : > { %v3217_v61 = vpop.permute.xlu1 %661  ;;  %v2585_v47 = vld [vmem:[%s3233_s2 + $0x30] sm:$0xff]  ;;  %v2622_v26 = vld [vmem:[%s3242_s21 + $0x40] sm:$0xff]  ;;  %v2595_v48 = vld [vmem:[%s3233_s2 + $0x58] sm:$0xff] }
  0xcb   : > { %v3219_v62 = vpop.permute.xlu0 %693 }
  0xd3   : > { %v3221_v63 = vpop.permute.xlu1 %725 }
  0xdb   : > { %v3223_v1 = vpop.permute.xlu0 %757 }
  0xe2   : > { %v3236_v3 = vpop.permute.xlu1 %789 }
  0xe3   : > { %v950_v5 = vpop.permute.xlu0 %949 }
  0xe4   : > { %vm953_vm1 = vcmp.ne.s32.totalorder %v950_v5, 0 }
  0xe5   : > { %v954_v52 = vsel %vm953_vm1, %v930_v4, %v2708_v0  ;;  %vm633_vm1 = vcmp.ne.s32.totalorder %v3215_v60, 0  ;;  %v2554_v60 = vld [vmem:[%s3228_s22 + $0x38] sm:$0xff] }
  0xe6   : > { %v981_v10 = vpop.permute.xlu1 %980  ;;  %v1982_v11 = vmul.f32 %v954_v52, %v443_v6  ;;  %v634_v52 = vsel %vm633_vm1, %v2552_v42, %v2708_v0 }
  0xe7   : > { %vm984_vm3 = vcmp.ne.s32.totalorder %v981_v10, 0  ;;  %v1461_v13 = vpop.permute.xlu0 %1460  ;;  %v2618_v10 = vld [vmem:[%s3242_s21 + $0x30] sm:$0xff] }
  0xe8   : > { %v985_v14 = vsel %vm984_vm3, %v2575_v9, %v2708_v0  ;;  %vm1464_vm4 = vcmp.ne.s32.totalorder %v1461_v13, 0  ;;  %1998 = vadd.xlane.f32.xlu0 %v1982_v11  ;;  %v2587_v11 = vld [vmem:[%s3233_s2 + $0x38] sm:$0xff] }
  0xe9   : > { %v1465_v57 = vsel %vm1464_vm4, %v1441_v2, %v2708_v0  ;;  %v1983_v16 = vmul.f32 %v985_v14, %v474_v12  ;;  %vm665_vm4 = vcmp.ne.s32.totalorder %v3217_v61, 0  ;;  %v2556_v61 = vld [vmem:[%s3228_s22 + $0x40] sm:$0xff] }
  0xea   : > { %v1492_v19 = vpop.permute.xlu1 %1491  ;;  %v2046_v21 = vmul.f32 %v1465_v57, %v443_v6 }
  0xeb   : > { %vm1495_vm6 = vcmp.ne.s32.totalorder %v1492_v19, 0  ;;  %2000 = vadd.xlane.f32.xlu1 %v1983_v16 }
  0xec   : > { %v1496_v24 = vsel %vm1495_vm6, %v2608_v15, %v2708_v0  ;;  %2062 = vadd.xlane.f32.xlu0 %v2046_v21  ;;  %v666_v15 = vsel %vm665_vm4, %v2554_v60, %v2708_v0 }
  0xed   : > { %v2047_v30 = vmul.f32 %v1496_v24, %v474_v12 }
  0xef   : > { %v1013_v23 = vpop.permute.xlu0 %1012  ;;  %v1524_v28 = vpop.permute.xlu1 %1523 }
  0xf0   : > { %vm1016_vm7 = vcmp.ne.s32.totalorder %v1013_v23, 0  ;;  %vm1527_vm9 = vcmp.ne.s32.totalorder %v1524_v28, 0  ;;  %2064 = vadd.xlane.f32.xlu0 %v2047_v30 }
  0xf1   : > { %v1017_v17 = vsel %vm1016_vm7, %v2577_v20, %v2708_v0  ;;  %v1528_v31 = vsel %vm1527_vm9, %v2610_v25, %v2708_v0  ;;  %vm697_vm7 = vcmp.ne.s32.totalorder %v3219_v62, 0  ;;  %v2589_v20 = vld [vmem:[%s3233_s2 + $0x40] sm:$0xff]  ;;  %v2558_v62 = vld [vmem:[%s3228_s22 + $0x48] sm:$0xff] }
  0xf2   : > { %v1984_v22 = vmul.f32 %v1017_v17, %v506_v7  ;;  %v2048_v32 = vmul.f32 %v1528_v31, %v506_v7  ;;  %v698_v17 = vsel %vm697_vm7, %v2556_v61, %v2708_v0 }
  0xf3   : > { %v1045_v27 = vpop.permute.xlu0 %1044  ;;  %v1556_v38 = vpop.permute.xlu1 %1555 }
  0xf4   : > { %vm1048_vm10 = vcmp.ne.s32.totalorder %v1045_v27, 0  ;;  %2002 = vadd.xlane.f32.xlu1 %v1984_v22  ;;  %vm1559_vm12 = vcmp.ne.s32.totalorder %v1556_v38, 0  ;;  %2066 = vadd.xlane.f32.xlu0 %v2048_v32  ;;  %v2593_v38 = vld [vmem:[%s3233_s2 + $0x50] sm:$0xff] }
  0xf5   : > { %v1049_v34 = vsel %vm1048_vm10, %v2579_v29, %v2708_v0  ;;  %v1560_v43 = vsel %vm1559_vm12, %v2612_v35, %v2708_v0  ;;  %vm729_vm10 = vcmp.ne.s32.totalorder %v3221_v63, 0  ;;  %v2591_v29 = vld [vmem:[%s3233_s2 + $0x48] sm:$0xff]  ;;  %v2560_v63 = vld [vmem:[%s3228_s22 + $0x50] sm:$0xff] }
  0xf6   : > { %v1985_v40 = vmul.f32 %v1049_v34, %v538_v33  ;;  %v2049_v37 = vmul.f32 %v1560_v43, %v538_v33  ;;  %v730_v33 = vsel %vm729_vm10, %v2558_v62, %v2708_v0  ;;  %v2624_v35 = vld [vmem:[%s3242_s21 + $0x48] sm:$0xff] }
  0xf8   : > { %v1077_v41 = vpop.permute.xlu0 %1076  ;;  %2004 = vadd.xlane.f32.xlu1 %v1985_v40  ;;  %v1588_v49 = vpop.permute.xlu1 %1587  ;;  %2068 = vadd.xlane.f32.xlu0 %v2049_v37 }
  0xf9   : > { %vm1080_vm13 = vcmp.ne.s32.totalorder %v1077_v41, 0  ;;  %vm1591_vm15 = vcmp.ne.s32.totalorder %v1588_v49, 0 }
  0xfa   : > { %v1081_v45 = vsel %vm1080_vm13, %v2581_v39, %v2708_v0  ;;  %v1592_v54 = vsel %vm1591_vm15, %v2614_v46, %v2708_v0  ;;  %vm761_vm13 = vcmp.ne.s32.totalorder %v3223_v1, 0  ;;  %v2562_v46 = vld [vmem:[%s3228_s22 + $0x58] sm:$0xff] }
  0xfb   : > { %v1986_v51 = vmul.f32 %v1081_v45, %v570_v44  ;;  %v2050_v5 = vmul.f32 %v1592_v54, %v570_v44  ;;  %v762_v43 = vsel %vm761_vm13, %v2560_v63, %v2708_v0  ;;  %v2626_v45 = vld [vmem:[%s3242_s21 + $0x50] sm:$0xff] }
  0xfd   : > { %2006 = vadd.xlane.f32.xlu1 %v1986_v51  ;;  %2070 = vadd.xlane.f32.xlu0 %v2050_v5 }
  0xfe   : > { %v1109_v53 = vpop.permute.xlu0 %1108  ;;  %v1620_v59 = vpop.permute.xlu1 %1619 }
  0xff   : > { %vm1112_vm0 = vcmp.ne.s32.totalorder %v1109_v53, 0  ;;  %vm1623_vm2 = vcmp.ne.s32.totalorder %v1620_v59, 0  ;;  %v2564_v59 = vld [vmem:[%s3228_s22 + $0x60] sm:$0xff] }
 0x100   : > { %v1113_v56 = vsel %vm1112_vm0, %v2583_v50, %v2708_v0  ;;  %v1624_v8 = vsel %vm1623_vm2, %v2616_v58, %v2708_v0  ;;  %vm793_vm0 = vcmp.ne.s32.totalorder %v3236_v3, 0 }
 0x101   : > { %v1987_v4 = vmul.f32 %v1113_v56, %v602_v55  ;;  %v2051_v12 = vmul.f32 %v1624_v8, %v602_v55  ;;  %v794_v53 = vsel %vm793_vm0, %v2562_v46, %v2708_v0  ;;  %v2628_v55 = vld [vmem:[%s3242_s21 + $0x58] sm:$0xff]  ;;  %v2630_v8 = vld [vmem:[%s3242_s21 + $0x60] sm:$0xff]  ;;  %vm2121_vm0 = vcmask 130112  }
 0x102   : > { %v1141_v6 = vpop.permute.xlu0 %1140  ;;  %v1652_v2 = vpop.permute.xlu1 %1651 }
 0x103   : > { %vm1144_vm3 = vcmp.ne.s32.totalorder %v1141_v6, 0  ;;  %2008 = vadd.xlane.f32.xlu1 %v1987_v4  ;;  %vm1655_vm5 = vcmp.ne.s32.totalorder %v1652_v2, 0  ;;  %2072 = vadd.xlane.f32.xlu0 %v2051_v12  ;;  %v2597_v4 = vld [vmem:[%s3233_s2 + $0x60] sm:$0xff]  ;;  %v2599_v12 = vld [vmem:[%s3233_s2 + $0x68] sm:$0xff] }
 0x104   : > { %v1145_v9 = vsel %vm1144_vm3, %v2585_v47, %v2708_v0  ;;  %v1656_v57 = vsel %vm1655_vm5, %v2618_v10, %v2708_v0 }
 0x105   : > { %v1988_v13 = vmul.f32 %v1145_v9, %v634_v52  ;;  %v2052_v23 = vmul.f32 %v1656_v57, %v634_v52 }
 0x107   : > { %v1173_v14 = vpop.permute.xlu0 %1172  ;;  %2010 = vadd.xlane.f32.xlu1 %v1988_v13  ;;  %v1684_v19 = vpop.permute.xlu1 %1683  ;;  %2074 = vadd.xlane.f32.xlu0 %v2052_v23  ;;  %v2566_v13 = vld [vmem:[%s3228_s22 + $0x68] sm:$0xff] }
 0x108   : > { %vm1176_vm6 = vcmp.ne.s32.totalorder %v1173_v14, 0  ;;  %vm1687_vm8 = vcmp.ne.s32.totalorder %v1684_v19, 0 }
 0x109   : > { %v1177_v16 = vsel %vm1176_vm6, %v2587_v11, %v2708_v0  ;;  %v1688_v7 = vsel %vm1687_vm8, %v2620_v18, %v2708_v0  ;;  %v2632_v18 = vld [vmem:[%s3242_s21 + $0x68] sm:$0xff] }
 0x10a   : > { %v1989_v21 = vmul.f32 %v1177_v16, %v666_v15  ;;  %v2053_v30 = vmul.f32 %v1688_v7, %v666_v15 }
 0x10b   : > { %v1205_v24 = vpop.permute.xlu0 %1204  ;;  %v1716_v28 = vpop.permute.xlu1 %1715 }
 0x10c   : > { %vm1208_vm9 = vcmp.ne.s32.totalorder %v1205_v24, 0  ;;  %2012 = vadd.xlane.f32.xlu1 %v1989_v21  ;;  %vm1719_vm11 = vcmp.ne.s32.totalorder %v1716_v28, 0  ;;  %2076 = vadd.xlane.f32.xlu0 %v2053_v30  ;;  %v2568_v21 = vld [vmem:[%s3228_s22 + $0x70] sm:$0xff] }
 0x10d   : > { %v1209_v25 = vsel %vm1208_vm9, %v2589_v20, %v2708_v0  ;;  %v1720_v31 = vsel %vm1719_vm11, %v2622_v26, %v2708_v0  ;;  %v2601_v24 = vld [vmem:[%s3233_s2 + $0x70] sm:$0xff] }
 0x10e   : > { %v1990_v22 = vmul.f32 %v1209_v25, %v698_v17  ;;  %v2054_v40 = vmul.f32 %v1720_v31, %v698_v17  ;;  %v2634_v26 = vld [vmem:[%s3242_s21 + $0x70] sm:$0xff]  ;;  %v2603_v31 = vld [vmem:[%s3233_s2 + $0x78] sm:$0xff] }
 0x110   : > { %v1237_v27 = vpop.permute.xlu0 %1236  ;;  %2014 = vadd.xlane.f32.xlu1 %v1990_v22  ;;  %v1748_v36 = vpop.permute.xlu1 %1747  ;;  %2078 = vadd.xlane.f32.xlu0 %v2054_v40 }
 0x111   : > { %vm1240_vm12 = vcmp.ne.s32.totalorder %v1237_v27, 0  ;;  %vm1751_vm14 = vcmp.ne.s32.totalorder %v1748_v36, 0  ;;  %v2570_v27 = vld [vmem:[%s3228_s22 + $0x78] sm:$0xff] }
 0x112   : > { %v1241_v34 = vsel %vm1240_vm12, %v2591_v29, %v2708_v0  ;;  %v1752_v41 = vsel %vm1751_vm14, %v2624_v35, %v2708_v0  ;;  %v2636_v36 = vld [vmem:[%s3242_s21 + $0x78] sm:$0xff] }
 0x113   : > { %v1991_v39 = vmul.f32 %v1241_v34, %v730_v33  ;;  %v2055_v50 = vmul.f32 %v1752_v41, %v730_v33 }
 0x114   : > { %v1269_v32 = vpop.permute.xlu0 %1268  ;;  %v1780_v1 = vpop.permute.xlu1 %1779 }
 0x115   : > { %vm1272_vm15 = vcmp.ne.s32.totalorder %v1269_v32, 0  ;;  %2016 = vadd.xlane.f32.xlu1 %v1991_v39  ;;  %vm1783_vm1 = vcmp.ne.s32.totalorder %v1780_v1, 0  ;;  %2080 = vadd.xlane.f32.xlu0 %v2055_v50 }
 0x116   : > { %v1273_v44 = vsel %vm1272_vm15, %v2593_v38, %v2708_v0  ;;  %v1784_v37 = vsel %vm1783_vm1, %v2626_v45, %v2708_v0  ;;  %vm2128_vm1 = vcmask 195712  }
 0x117   : > { %v1992_v49 = vmul.f32 %v1273_v44, %v762_v43  ;;  %v2056_v58 = vmul.f32 %v1784_v37, %v762_v43 }
 0x118   : > { %v1301_v51 = vpop.permute.xlu0 %1300  ;;  %v1812_v3 = vpop.permute.xlu1 %1811 }
 0x119   : > { %vm1304_vm2 = vcmp.ne.s32.totalorder %v1301_v51, 0  ;;  %2018 = vadd.xlane.f32.xlu1 %v1992_v49  ;;  %vm1815_vm3 = vcmp.ne.s32.totalorder %v1812_v3, 0  ;;  %2082 = vadd.xlane.f32.xlu0 %v2056_v58 }
 0x11a   : > { %v1305_v54 = vsel %vm1304_vm2, %v2595_v48, %v2708_v0  ;;  %v1816_v47 = vsel %vm1815_vm3, %v2628_v55, %v2708_v0  ;;  %vm2135_vm2 = vcmask 261312   ;;  %vm2142_vm3 = vcmask 326912  }
 0x11b   : > { %v1993_v56 = vmul.f32 %v1305_v54, %v794_v53  ;;  %v2057_v52 = vmul.f32 %v1816_v47, %v794_v53 }
 0x11c   : > { %v822_v42 = vpop.permute.xlu0 %821  ;;  %v1333_v6 = vpop.permute.xlu1 %1332 }
 0x11d   : > { %vm825_vm4 = vcmp.ne.s32.totalorder %v822_v42, 0  ;;  %2020 = vadd.xlane.f32.xlu1 %v1993_v56  ;;  %vm1336_vm5 = vcmp.ne.s32.totalorder %v1333_v6, 0  ;;  %2084 = vadd.xlane.f32.xlu0 %v2057_v52  ;;  %v2110_v42 = vlaneseq }
 0x11e   : > { %v826_v5 = vsel %vm825_vm4, %v2564_v59, %v2708_v0  ;;  %v1337_v10 = vsel %vm1336_vm5, %v2597_v4, %v2708_v0  ;;  %vm2149_vm4 = vcmask 392512   ;;  %vm2156_vm5 = vcmask 458112  }
 0x11f   : > { %v1994_v2 = vmul.f32 %v1337_v10, %v826_v5  ;;  %v2111_v4 = vand.u32 127, %v2110_v42 }
 0x120   : > { %v1844_v9 = vpop.permute.xlu0 %1843  ;;  %v854_v11 = vpop.permute.xlu1 %853 }
 0x121   : > { %vm1847_vm6 = vcmp.ne.s32.totalorder %v1844_v9, 0  ;;  %vm857_vm7 = vcmp.ne.s32.totalorder %v854_v11, 0  ;;  %2022 = vadd.xlane.f32.xlu1 %v1994_v2  ;;  %v2116_v52 = vadd.s32 4294967288, %v2111_v4  ;;  %v2123_v10 = vadd.s32 4294967280, %v2111_v4 }
 0x122   : > { %v1848_v60 = vsel %vm1847_vm6, %v2630_v8, %v2708_v0  ;;  %v858_v15 = vsel %vm857_vm7, %v2566_v13, %v2708_v0  ;;  %v3389_v8 = vshrl.u32 %v2110_v42, 7  ;;  %v2137_v2 = vadd.s32 4294967264, %v2111_v4 }
 0x123   : > { %v2058_v14 = vmul.f32 %v1848_v60, %v826_v5  ;;  %v2130_v60 = vadd.s32 4294967272, %v2111_v4  ;;  %v2144_v11 = vadd.s32 4294967256, %v2111_v4  ;;  %vm2163_vm6 = vcmask 523712  }
 0x124   : > { %v1365_v57 = vpop.permute.xlu0 %1364  ;;  %v1876_v61 = vpop.permute.xlu1 %1875  ;;  %v2114_v13 = vsub.s32 %v2111_v4, %v3389_v8  ;;  %vm2170_vm7 = vcmask 589312  }
 0x125   : > { %vm1368_vm8 = vcmp.ne.s32.totalorder %v1365_v57, 0  ;;  %2086 = vadd.xlane.f32.xlu0 %v2058_v14  ;;  %vm1879_vm9 = vcmp.ne.s32.totalorder %v1876_v61, 0  ;;  %v2151_v14 = vadd.s32 4294967248, %v2111_v4  ;;  %v2133_v61 = vsub.s32 %v2130_v60, %v3389_v8 }
 0x126   : > { %v1369_v16 = vsel %vm1368_vm8, %v2599_v12, %v2708_v0  ;;  %v1880_v23 = vsel %vm1879_vm9, %v2632_v18, %v2708_v0  ;;  %v2119_v12 = vsub.s32 %v2116_v52, %v3389_v8  ;;  %vm2177_vm8 = vcmask 654912  }
 0x127   : > { %v1995_v19 = vmul.f32 %v1369_v16, %v858_v15  ;;  %v2059_v7 = vmul.f32 %v1880_v23, %v858_v15  ;;  %v2126_v15 = vsub.s32 %v2123_v10, %v3389_v8  ;;  %v2158_v16 = vadd.s32 4294967240, %v2111_v4 }
 0x128   : > { %v886_v20 = vpop.permute.xlu0 %885  ;;  %v1397_v25 = vpop.permute.xlu1 %1396  ;;  %v2172_v23 = vadd.s32 4294967224, %v2111_v4  ;;  %vm2184_vm9 = vcmask 720512  }
 0x129   : > { %vm889_vm10 = vcmp.ne.s32.totalorder %v886_v20, 0  ;;  %2024 = vadd.xlane.f32.xlu1 %v1995_v19  ;;  %vm1400_vm11 = vcmp.ne.s32.totalorder %v1397_v25, 0  ;;  %2088 = vadd.xlane.f32.xlu0 %v2059_v7  ;;  %v3402_v19 = vsub.s32 %v2137_v2, %v3389_v8  ;;  %v2165_v20 = vadd.s32 4294967232, %v2111_v4 }
 0x12a   : > { %v890_v17 = vsel %vm889_vm10, %v2568_v21, %v2708_v0  ;;  %v1401_v28 = vsel %vm1400_vm11, %v2601_v24, %v2708_v0  ;;  %v3405_v21 = vsub.s32 %v2144_v11, %v3389_v8  ;;  %v2179_v24 = vadd.s32 4294967216, %v2111_v4 }
 0x12b   : > { %v1996_v22 = vmul.f32 %v1401_v28, %v890_v17  ;;  %v3408_v7 = vsub.s32 %v2151_v14, %v3389_v8  ;;  %v2193_v25 = vadd.s32 4294967200, %v2111_v4  ;;  %v2207_v28 = vadd.s32 4294967184, %v2111_v4 }
 0x12c   : > { %v1908_v62 = vpop.permute.xlu0 %1907  ;;  %v918_v30 = vpop.permute.xlu1 %917  ;;  %vm2191_vm10 = vcmask 786112   ;;  %vm2198_vm11 = vcmask 851712  }
 0x12d   : > { %vm1911_vm12 = vcmp.ne.s32.totalorder %v1908_v62, 0  ;;  %vm921_vm13 = vcmp.ne.s32.totalorder %v918_v30, 0  ;;  %2026 = vadd.xlane.f32.xlu1 %v1996_v22  ;;  %v2200_v62 = vadd.s32 4294967192, %v2111_v4  ;;  %v3416_v30 = vsub.s32 %v2165_v20, %v3389_v8 }
 0x12e   : > { %v1912_v29 = vsel %vm1911_vm12, %v2634_v26, %v2708_v0  ;;  %v922_v35 = vsel %vm921_vm13, %v2570_v27, %v2708_v0  ;;  %v3411_v26 = vsub.s32 %v2158_v16, %v3389_v8  ;;  %vm2205_vm12 = vcmask 917312  }
 0x12f   : > { %v2060_v33 = vmul.f32 %v1912_v29, %v890_v17  ;;  %v2186_v17 = vadd.s32 4294967208, %v2111_v4  ;;  %vm2212_vm13 = vcmask 982912  }
 0x130   : > { %v1429_v34 = vpop.permute.xlu0 %1428  ;;  %v1940_v38 = vpop.permute.xlu1 %1939 }
 0x131   : > { %vm1432_vm14 = vcmp.ne.s32.totalorder %v1429_v34, 0  ;;  %2090 = vadd.xlane.f32.xlu0 %v2060_v33  ;;  %vm1943_vm15 = vcmp.ne.s32.totalorder %v1940_v38, 0  ;;  %v3422_v33 = vsub.s32 %v2172_v23, %v3389_v8  ;;  %v3425_v34 = vsub.s32 %v2179_v24, %v3389_v8 }
 0x132   : > { %v1433_v63 = vsel %vm1432_vm14, %v2603_v31, %v2708_v0  ;;  %v1944_v40 = vsel %vm1943_vm15, %v2636_v36, %v2708_v0  ;;  %vm2219_vm14 = vcmask 1048512   ;;  %vm2318_vm15 = vcmask 1040384  }
 0x133   : > { %v1997_v39 = vmul.f32 %v1433_v63, %v922_v35  ;;  %v2061_v32 = vmul.f32 %v1944_v40, %v922_v35  ;;  %v2214_v63 = vadd.s32 4294967176, %v2111_v4  ;;  %v3435_v40 = vsub.s32 %v2193_v25, %v3389_v8 }
 0x135   : > { %2028 = vadd.xlane.f32.xlu1 %v1997_v39  ;;  %2092 = vadd.xlane.f32.xlu0 %v2061_v32  ;;  %v3432_v39 = vsub.s32 %v2186_v17, %v3389_v8  ;;  %v2217_v60 = vsub.s32 %v2214_v63, %v3389_v8 }
 0x171   : > { %v3347_v41 = vpop.xlane.xlu0 %1998 }
 0x172   : > { %v2115_v29 = vrot.slane %v3347_v41, %v2114_v13 }
 0x174   : > { %v3349_v43 = vpop.xlane.xlu1 %2000 }
 0x175   : > { %v3351_v44 = vpop.xlane.xlu0 %2062  ;;  %v2120_v22 = vrot.slane %v3349_v43, %v2119_v12  ;;  %v3441_v43 = vsub.s32 %v2200_v62, %v3389_v8 }
 0x179   : > { %v3355_v46 = vpop.xlane.xlu0 %2064 }
 0x17a   : > { %v2245_v36 = vrot.slane %v3355_v46, %v2119_v12  ;;  %v2122_v46 = vsel %vm2121_vm0, %v2120_v22, %v2115_v29 }
 0x17d   : > { %v3353_v45 = vpop.xlane.xlu1 %2002  ;;  %v3359_v48 = vpop.xlane.xlu0 %2066 }
 0x17e   : > { %v2127_v31 = vrot.slane %v3353_v45, %v2126_v15  ;;  %v2250_v32 = vrot.slane %v3359_v48, %v2126_v15  ;;  %v3444_v45 = vsub.s32 %v2207_v28, %v3389_v8 }
 0x181   : > { %v3357_v1 = vpop.xlane.xlu1 %2004  ;;  %v3363_v50 = vpop.xlane.xlu0 %2068 }
 0x182   : > { %v2134_v38 = vrot.slane %v3357_v1, %v2133_v61  ;;  %v2241_v1 = vrot.slane %v3351_v44, %v2114_v13  ;;  %v2255_v42 = vrot.slane %v3363_v50, %v2133_v61 }
 0x184   : > { %v2246_v44 = vsel %vm2121_vm0, %v2245_v36, %v2241_v1 }
 0x186   : > { %v3361_v49 = vpop.xlane.xlu1 %2006  ;;  %v3367_v37 = vpop.xlane.xlu0 %2070 }
 0x187   : > { %v2141_v41 = vrot.slane %v3361_v49, %v3402_v19  ;;  %v2129_v49 = vsel %vm2128_vm1, %v2127_v31, %v2122_v46  ;;  %v2260_v52 = vrot.slane %v3367_v37, %v3402_v19  ;;  %v2251_v37 = vsel %vm2128_vm1, %v2250_v32, %v2246_v44 }
 0x188   : > { %v2136_v50 = vsel %vm2135_vm2, %v2134_v38, %v2129_v49  ;;  %v2256_v12 = vsel %vm2135_vm2, %v2255_v42, %v2251_v37 }
 0x189   : > { %v2143_v11 = vsel %vm2142_vm3, %v2141_v41, %v2136_v50  ;;  %v2261_v15 = vsel %vm2142_vm3, %v2260_v52, %v2256_v12 }
 0x18c   : > { %v3365_v51 = vpop.xlane.xlu1 %2008  ;;  %v3371_v54 = vpop.xlane.xlu0 %2072 }
 0x18d   : > { %v2148_v4 = vrot.slane %v3365_v51, %v3405_v21  ;;  %v2265_v51 = vrot.slane %v3371_v54, %v3405_v21 }
 0x18f   : > { %v2150_v14 = vsel %vm2149_vm4, %v2148_v4, %v2143_v11  ;;  %v2266_v61 = vsel %vm2149_vm4, %v2265_v51, %v2261_v15 }
 0x190   : > { %v3369_v53 = vpop.xlane.xlu1 %2010  ;;  %v3375_v3 = vpop.xlane.xlu0 %2074 }
 0x191   : > { %v2155_v10 = vrot.slane %v3369_v53, %v3408_v7  ;;  %v2270_v53 = vrot.slane %v3375_v3, %v3408_v7 }
 0x193   : > { %v2157_v16 = vsel %vm2156_vm5, %v2155_v10, %v2150_v14  ;;  %v2271_v21 = vsel %vm2156_vm5, %v2270_v53, %v2266_v61 }
 0x195   : > { %v3373_v55 = vpop.xlane.xlu1 %2012  ;;  %v3379_v58 = vpop.xlane.xlu0 %2076 }
 0x196   : > { %v2162_v2 = vrot.slane %v3373_v55, %v3411_v26  ;;  %v2275_v54 = vrot.slane %v3379_v58, %v3411_v26 }
 0x198   : > { %v2164_v58 = vsel %vm2163_vm6, %v2162_v2, %v2157_v16  ;;  %v2276_v7 = vsel %vm2163_vm6, %v2275_v54, %v2271_v21 }
 0x199   : > { %v3377_v56 = vpop.xlane.xlu1 %2014  ;;  %v3383_v47 = vpop.xlane.xlu0 %2078 }
 0x19a   : > { %v2169_v8 = vrot.slane %v3377_v56, %v3416_v30  ;;  %v2280_v3 = vrot.slane %v3383_v47, %v3416_v30 }
 0x19c   : > { %v2171_v47 = vsel %vm2170_vm7, %v2169_v8, %v2164_v58  ;;  %v2281_v25 = vsel %vm2170_vm7, %v2280_v3, %v2276_v7 }
 0x19e   : > { %v3381_v59 = vpop.xlane.xlu1 %2016  ;;  %v3385_v5 = vpop.xlane.xlu0 %2080 }
 0x19f   : > { %v2176_v55 = vrot.slane %v3381_v59, %v3422_v33  ;;  %v2285_v59 = vrot.slane %v3385_v5, %v3422_v33 }
 0x1a1   : > { %v2178_v17 = vsel %vm2177_vm8, %v2176_v55, %v2171_v47  ;;  %v2286_v28 = vsel %vm2177_vm8, %v2285_v59, %v2281_v25 }
 0x1a2   : > { %v3387_v6 = vpop.xlane.xlu1 %2018  ;;  %v3391_v9 = vpop.xlane.xlu0 %2082 }
 0x1a3   : > { %v2183_v56 = vrot.slane %v3387_v6, %v3425_v34  ;;  %v2290_v23 = vrot.slane %v3391_v9, %v3425_v34 }
 0x1a5   : > { %v2185_v26 = vsel %vm2184_vm9, %v2183_v56, %v2178_v17  ;;  %v2291_v30 = vsel %vm2184_vm9, %v2290_v23, %v2286_v28 }
 0x1a6   : > { %v3395_v57 = vpop.xlane.xlu1 %2020  ;;  %v3398_v18 = vpop.xlane.xlu0 %2084 }
 0x1a7   : > { %v2190_v19 = vrot.slane %v3395_v57, %v3432_v39  ;;  %v2295_v5 = vrot.slane %v3398_v18, %v3432_v39 }
 0x1a9   : > { %v2192_v29 = vsel %vm2191_vm10, %v2190_v19, %v2185_v26  ;;  %v2296_v34 = vsel %vm2191_vm10, %v2295_v5, %v2291_v30 }
 0x1aa   : > { %v3418_v27 = vpop.xlane.xlu1 %2022 }
 0x1ab   : > { %v2197_v6 = vrot.slane %v3418_v27, %v3435_v40 }
 0x1ad   : > { %v2199_v27 = vsel %vm2198_vm11, %v2197_v6, %v2192_v29 }
 0x1ae   : > { %v3427_v35 = vpop.xlane.xlu0 %2086 }
 0x1af   : > { %v2300_v9 = vrot.slane %v3427_v35, %v3435_v40 }
 0x1b1   : > { %v2301_v63 = vsel %vm2198_vm11, %v2300_v9, %v2296_v34 }
 0x1b2   : > { %v2025_v48 = vpop.xlane.xlu1 %2024  ;;  %v2089_v13 = vpop.xlane.xlu0 %2088 }
 0x1b3   : > { %v2204_v57 = vrot.slane %v2025_v48, %v3441_v43  ;;  %v2305_v22 = vrot.slane %v2089_v13, %v3441_v43 }
 0x1b5   : > { %v2206_v35 = vsel %vm2205_vm12, %v2204_v57, %v2199_v27  ;;  %v2306_v39 = vsel %vm2205_vm12, %v2305_v22, %v2301_v63 }
 0x1b6   : > { %v2027_v20 = vpop.xlane.xlu1 %2026 }
 0x1b7   : > { %v2211_v62 = vrot.slane %v2027_v20, %v3444_v45 }
 0x1b9   : > { %v2213_v36 = vsel %vm2212_vm13, %v2211_v62, %v2206_v35 }
 0x1ba   : > { %v2091_v24 = vpop.xlane.xlu0 %2090 }
 0x1bb   : > { %v2310_v31 = vrot.slane %v2091_v24, %v3444_v45 }
 0x1bd   : > { %v2311_v41 = vsel %vm2212_vm13, %v2310_v31, %v2306_v39 }
 0x1be   : > { %v2029_v18 = vpop.xlane.xlu1 %2028  ;;  %v2093_v38 = vpop.xlane.xlu0 %2092 }
 0x1bf   : > { %v2218_v33 = vrot.slane %v2029_v18, %v2217_v60  ;;  %v2315_v32 = vrot.slane %v2093_v38, %v2217_v60 }
 0x1c1   : > { %v2220_v40 = vsel %vm2219_vm14, %v2218_v33, %v2213_v36  ;;  %v2316_v43 = vsel %vm2219_vm14, %v2315_v32, %v2311_v41 }
 0x1c2   : > { %v2319_v45 = vsel %vm2318_vm15, %v2220_v40, %v2316_v43 }
 0x1c3   : > { %2320 = vst [vmem:[%s416_s11] sm:$0x3] %v2319_v45 }
 0x1c4 PF: > { %s3641_s0 = sld [smem:[#allocation5_spill]] }
 0x1ca   : > { %s20_s26 = sadd.s32 1, %s3641_s0  }
 0x1cb   : > { %p17_p7 = scmp.ge.s32.totalorder %s20_s26, 4  }
 0x1cd   :  { %19 = sbr.rel (!%p17_p7) target bundleno = 6 (0x6), region = 275 }

</bundles_post_ra>
